<compile_context>
chip_gen: v6e
topology: v6e:2x2x1
jax: 0.10.0
libtpu: 0.0.40
codegen_flags: <defaults>
</compile_context>

<pallas_src>
import functools

import jax
import jax.numpy as jnp
from jax import lax
from jax.experimental import pallas as pl
from jax.experimental.pallas import tpu as pltpu

LANE = 128                 # vreg lane width
SUBLANE = 8                # vreg sublane count
MIN_BLOCK = SUBLANE * LANE  # minimal pad granularity (1024 elements)
MAX_BLOCK_ROWS = 1024       # (1024, 128) f32 tile = 512 KiB per stream


# ----------------------------- kernels ------------------------------------- #

def _l1_reduce_kernel(p_ref, t_ref, o_ref, acc_ref, *, valid_rows, inv_scale):
    """Accumulate sum(|p - t|) into a block-shaped VMEM accumulator; reduce once
    on the last grid step and write (sum * inv_scale) to the (1,1) output."""
    i = pl.program_id(0)
    nblk = pl.num_programs(0)

    @pl.when(i == 0)
    def _init():
        acc_ref[...] = jnp.zeros_like(acc_ref)

    d = jnp.abs(p_ref[...].astype(jnp.float32) - t_ref[...].astype(jnp.float32))

    block_rows = acc_ref.shape[0]
    if valid_rows % block_rows != 0:  # static: only then can a block be partial
        row_ids = i * block_rows + lax.broadcasted_iota(jnp.int32, d.shape, 0)
        d = jnp.where(row_ids < valid_rows, d, 0.0)

    acc_ref[...] += d

    @pl.when(i == nblk - 1)
    def _fin():
        col = jnp.sum(acc_ref[...], axis=0, keepdims=True)   # (1, LANE)
        tot = jnp.sum(col, axis=1, keepdims=True)             # (1, 1)
        o_ref[...] = tot * inv_scale


def _l1_wreduce_kernel(p_ref, t_ref, w_ref, o_ref, acc_ref, wacc_ref, *,
                       valid_rows, mean):
    """Accumulate sum(w * |p - t|) (and sum(w) if mean); final reduce + divide
    fused into the last grid step."""
    i = pl.program_id(0)
    nblk = pl.num_programs(0)

    @pl.when(i == 0)
    def _init():
        acc_ref[...] = jnp.zeros_like(acc_ref)
        if mean:
            wacc_ref[...] = jnp.zeros_like(wacc_ref)

    w = w_ref[...].astype(jnp.float32)
    d = jnp.abs(p_ref[...].astype(jnp.float32) - t_ref[...].astype(jnp.float32)) * w

    block_rows = acc_ref.shape[0]
    if valid_rows % block_rows != 0:  # static
        row_ids = i * block_rows + lax.broadcasted_iota(jnp.int32, d.shape, 0)
        mask = row_ids < valid_rows
        d = jnp.where(mask, d, 0.0)
        w = jnp.where(mask, w, 0.0)

    acc_ref[...] += d
    if mean:
        wacc_ref[...] += w

    @pl.when(i == nblk - 1)
    def _fin():
        s = jnp.sum(jnp.sum(acc_ref[...], axis=0, keepdims=True),
                    axis=1, keepdims=True)                     # (1, 1)
        if mean:
            ws = jnp.sum(jnp.sum(wacc_ref[...], axis=0, keepdims=True),
                         axis=1, keepdims=True)                # (1, 1)
            o_ref[...] = s / ws
        else:
            o_ref[...] = s


def _l1_elem_kernel(p_ref, t_ref, o_ref):
    o_ref[...] = jnp.abs(p_ref[...] - t_ref[...]).astype(o_ref.dtype)


def _l1_welem_kernel(p_ref, t_ref, w_ref, o_ref):
    o_ref[...] = (jnp.abs(p_ref[...] - t_ref[...]) * w_ref[...]).astype(o_ref.dtype)


# ----------------------------- wrappers ------------------------------------ #

def _to_slab(x):
    """Flatten to a lane-dense (rows, 128) slab with rows % 8 == 0.

    Fast path: when numel % 1024 == 0 (typical NCHW image tensors) this is a
    free reshape (no extra HBM pass).  Otherwise zero-pad up to the next
    multiple of 1024; the zeros contribute 0 to every reduction.
    """
    flat = x.reshape(-1)
    n = flat.shape[0]
    pad = (-n) % MIN_BLOCK
    if pad:
        flat = jnp.concatenate([flat, jnp.zeros((pad,), flat.dtype)])
    return flat.reshape(-1, LANE), n, pad


def _pick_block_rows(rows):
    # rows is always a multiple of 8 (see _to_slab), so min() stays (8,128)-legal.
    return min(MAX_BLOCK_ROWS, rows)


def _row_spec(block_rows):
    return pl.BlockSpec((block_rows, LANE), lambda i: (i, 0))


def _scalar_spec():
    return pl.BlockSpec((1, 1), lambda i: (0, 0))


def _run_reduce(p2d, t2d, inv_scale):
    rows = p2d.shape[0]
    br = _pick_block_rows(rows)
    grid = (pl.cdiv(rows, br),)
    kernel = functools.partial(_l1_reduce_kernel, valid_rows=rows,
                               inv_scale=inv_scale)
    out = pl.pallas_call(
        kernel,
        out_shape=jax.ShapeDtypeStruct((1, 1), jnp.float32),
        grid_spec=pltpu.PrefetchScalarGridSpec(
            num_scalar_prefetch=0,
            grid=grid,
            in_specs=[_row_spec(br), _row_spec(br)],
            out_specs=_scalar_spec(),
            scratch_shapes=[pltpu.VMEM((br, LANE), jnp.float32)],
        ),
        compiler_params=pltpu.CompilerParams(
            dimension_semantics=("arbitrary",)),
    )(p2d, t2d)
    return out[0, 0]


def _run_wreduce(p2d, t2d, w2d, mean):
    rows = p2d.shape[0]
    br = _pick_block_rows(rows)
    grid = (pl.cdiv(rows, br),)
    kernel = functools.partial(_l1_wreduce_kernel, valid_rows=rows, mean=mean)
    out = pl.pallas_call(
        kernel,
        out_shape=jax.ShapeDtypeStruct((1, 1), jnp.float32),
        grid_spec=pltpu.PrefetchScalarGridSpec(
            num_scalar_prefetch=0,
            grid=grid,
            in_specs=[_row_spec(br), _row_spec(br), _row_spec(br)],
            out_specs=_scalar_spec(),
            scratch_shapes=[pltpu.VMEM((br, LANE), jnp.float32),
                            pltpu.VMEM((br, LANE), jnp.float32)],
        ),
        compiler_params=pltpu.CompilerParams(
            dimension_semantics=("arbitrary",)),
    )(p2d, t2d, w2d)
    return out[0, 0]


def _run_elem(p2d, t2d, w2d=None):
    rows = p2d.shape[0]
    br = _pick_block_rows(rows)
    grid = (pl.cdiv(rows, br),)
    if w2d is None:
        kernel, specs, ops = _l1_elem_kernel, [_row_spec(br)] * 2, (p2d, t2d)
    else:
        kernel, specs, ops = _l1_welem_kernel, [_row_spec(br)] * 3, (p2d, t2d, w2d)
    return pl.pallas_call(
        kernel,
        out_shape=jax.ShapeDtypeStruct(p2d.shape, p2d.dtype),
        grid=grid,
        in_specs=specs,
        out_specs=_row_spec(br),
        compiler_params=pltpu.CompilerParams(
            dimension_semantics=("parallel",)),
    )(*ops)


def l1_loss_pallas(pred, target, weight=None, reduction="mean"):
    """Matches traiNNer's @weighted_loss l1_loss(pred, target, weight, reduction)."""
    if reduction not in ("none", "mean", "sum"):
        raise ValueError(f"Unsupported reduction mode: {reduction}. "
                         f"Supported ones are: ['none', 'mean', 'sum']")
    assert pred.shape == target.shape

    p2d, n, pad = _to_slab(pred)
    t2d, _, _ = _to_slab(target)

    w2d = None
    if weight is not None:
        # Allow broadcastable weights (e.g. (N,1,H,W)).  Broadcasting first and
        # dividing by sum(broadcast weight) reproduces basicsr's
        # weight_reduce_loss for both single- and full-channel weights.
        w_full = jnp.broadcast_to(weight, pred.shape).astype(pred.dtype)
        w2d, _, _ = _to_slab(w_full)

    if reduction == "none":
        out2d = _run_elem(p2d, t2d, w2d)
        if pad:
            return out2d.reshape(-1)[:n].reshape(pred.shape)
        return out2d.reshape(pred.shape)

    if weight is None:
        inv_scale = 1.0 if reduction == "sum" else 1.0 / float(n)
        s = _run_reduce(p2d, t2d, inv_scale)
        return s.astype(pred.dtype)

    s = _run_wreduce(p2d, t2d, w2d, mean=(reduction == "mean"))
    return s.astype(pred.dtype)


class L1Loss:
    """JAX/Pallas port of traiNNer L1Loss (forward semantics of the reference)."""

    def __init__(self, loss_weight: float, reduction: str = "mean") -> None:
        if reduction not in ["none", "mean", "sum"]:
            raise ValueError(f"Unsupported reduction mode: {reduction}. "
                             f"Supported ones are: ['none', 'mean', 'sum']")
        self.loss_weight = loss_weight  # stored; reference forward() does not apply it
        self.reduction = reduction

    def __call__(self, pred, target, weight=None, **kwargs):
        return l1_loss_pallas(pred, target, weight, reduction=self.reduction)


# ------------------------------- demo --------------------------------------- #

if __name__ == "__main__":
    key = jax.random.PRNGKey(0)
    k1, k2, k3 = jax.random.split(key, 3)

    # Small NCHW inputs (aligned fast path: 2*4*16*16 = 2048 elements, no pad).
    N, C, H, W = 2, 4, 16, 16
    pred = jax.random.normal(k1, (N, C, H, W), dtype=jnp.float32)
    target = jax.random.normal(k2, (N, C, H, W), dtype=jnp.float32)
    weight = jax.nn.sigmoid(jax.random.normal(k3, (N, C, H, W), dtype=jnp.float32))

    loss_mod = L1Loss(loss_weight=1.0, reduction="mean")

    # mean reduction (default path)
    out_mean = loss_mod(pred, target)
    jax.block_until_ready(out_mean)
    assert jnp.allclose(out_mean, jnp.mean(jnp.abs(pred - target)),
                        rtol=1e-5, atol=1e-5)

    # sum reduction
    out_sum = l1_loss_pallas(pred, target, reduction="sum")
    jax.block_until_ready(out_sum)
    assert jnp.allclose(out_sum, jnp.sum(jnp.abs(pred - target)),
                        rtol=1e-4, atol=1e-3)

    # none reduction with element-wise weight
    out_none = l1_loss_pallas(pred, target, weight, reduction="none")
    jax.block_until_ready(out_none)
    assert out_none.shape == pred.shape
    assert jnp.allclose(out_none, jnp.abs(pred - target) * weight,
                        rtol=1e-5, atol=1e-5)

    # weighted mean reduction (full-shape weight)
    out_wmean = l1_loss_pallas(pred, target, weight, reduction="mean")
    jax.block_until_ready(out_wmean)
    assert jnp.allclose(
        out_wmean,
        jnp.sum(jnp.abs(pred - target) * weight) / jnp.sum(weight),
        rtol=1e-5, atol=1e-5)

    # weighted mean with broadcastable single-channel weight (basicsr semantics:
    # denominator = weight.sum() * C == sum of the broadcast weight).
    w1 = jax.nn.sigmoid(jax.random.normal(k3, (N, 1, H, W), dtype=jnp.float32))
    out_w1 = l1_loss_pallas(pred, target, w1, reduction="mean")
    jax.block_until_ready(out_w1)
    ref_w1 = jnp.sum(jnp.abs(pred - target) * w1) / (jnp.sum(w1) * C)
    assert jnp.allclose(out_w1, ref_w1, rtol=1e-5, atol=1e-5)

    # Larger shape exercising the multi-block grid + partial-last-block mask
    # (2*3*160*160 = 153600 elems -> 1200 rows -> block 1024, grid 2, tail 176 rows).
    kp, kt, kw = jax.random.split(jax.random.PRNGKey(1), 3)
    p_big = jax.random.normal(kp, (2, 3, 160, 160), dtype=jnp.float32)
    t_big = jax.random.normal(kt, (2, 3, 160, 160), dtype=jnp.float32)
    w_big = jax.nn.sigmoid(jax.random.normal(kw, (2, 3, 160, 160), dtype=jnp.float32))
    out_big = l1_loss_pallas(p_big, t_big, reduction="mean")
    jax.block_until_ready(out_big)
    assert jnp.allclose(out_big, jnp.mean(jnp.abs(p_big - t_big)),
                        rtol=1e-4, atol=1e-5)
    out_big_w = l1_loss_pallas(p_big, t_big, w_big, reduction="mean")
    jax.block_until_ready(out_big_w)
    assert jnp.allclose(
        out_big_w,
        jnp.sum(jnp.abs(p_big - t_big) * w_big) / jnp.sum(w_big),
        rtol=1e-4, atol=1e-5)

    # Unaligned shape exercising the zero-pad tail path (1*3*11*13 = 429 elems).
    ku1, ku2 = jax.random.split(jax.random.PRNGKey(2), 2)
    p_odd = jax.random.normal(ku1, (1, 3, 11, 13), dtype=jnp.float32)
    t_odd = jax.random.normal(ku2, (1, 3, 11, 13), dtype=jnp.float32)
    out_odd = l1_loss_pallas(p_odd, t_odd, reduction="mean")
    out_odd_none = l1_loss_pallas(p_odd, t_odd, reduction="none")
    jax.block_until_ready((out_odd, out_odd_none))
    assert jnp.allclose(out_odd, jnp.mean(jnp.abs(p_odd - t_odd)),
                        rtol=1e-5, atol=1e-5)
    assert out_odd_none.shape == p_odd.shape
    assert jnp.allclose(out_odd_none, jnp.abs(p_odd - t_odd),
                        rtol=1e-5, atol=1e-5)

    print("KERNEL_OK")
</pallas_src>

<mosaic_0001>
module attributes {stable_mosaic.version = 11 : i64} {
  func.func @_l1_reduce_kernel(%arg0: i32, %arg1: memref<16x128xf32, #tpu.memory_space<vmem>>, %arg2: memref<16x128xf32, #tpu.memory_space<vmem>>, %arg3: memref<1x1xf32, #tpu.memory_space<vmem>>, %arg4: memref<16x128xf32, #tpu.memory_space<vmem>>) attributes {dimension_semantics = [#tpu.dimension_semantics<arbitrary>], iteration_bounds = array<i64: 1>, scalar_prefetch = 0 : i64, scratch_operands = 1 : i64, tpu.core_type = #tpu.core_type<tc>, window_params = [{transform_indices = @transform_0, window_bounds = array<i64: 16, 128>}, {transform_indices = @transform_1, window_bounds = array<i64: 16, 128>}, {pipeline_mode = #tpu.pipeline_mode<synchronous>, transform_indices = @transform_2, window_bounds = array<i64: 1, 1>}]} {
    %c0_i32 = arith.constant 0 : i32
    %0 = arith.cmpi eq, %arg0, %c0_i32 : i32
    %1 = arith.extui %0 : i1 to i32
    %c0_i32_0 = arith.constant 0 : i32
    %2 = arith.cmpi ne, %1, %c0_i32_0 : i32
    scf.if %2 {
      %cst = arith.constant 0.000000e+00 : f32
      %13 = vector.broadcast %cst : f32 to vector<16x128xf32>
      %c0_10 = arith.constant 0 : index
      %c0_11 = arith.constant 0 : index
      %14 = vector.load %arg4[%c0_10, %c0_11] : memref<16x128xf32, #tpu.memory_space<vmem>>, vector<16x128xf32>
      tpu.vector_store %arg4[%c0_10, %c0_11], %13 {strides = array<i32>} : memref<16x128xf32, #tpu.memory_space<vmem>>, vector<16x128xf32>,
    } else {
    }
    %c0 = arith.constant 0 : index
    %c0_1 = arith.constant 0 : index
    %3 = vector.load %arg1[%c0, %c0_1] : memref<16x128xf32, #tpu.memory_space<vmem>>, vector<16x128xf32>
    %c0_2 = arith.constant 0 : index
    %c0_3 = arith.constant 0 : index
    %4 = vector.load %arg2[%c0_2, %c0_3] : memref<16x128xf32, #tpu.memory_space<vmem>>, vector<16x128xf32>
    %5 = arith.subf %3, %4 : vector<16x128xf32>
    %6 = math.absf %5 : vector<16x128xf32>
    %c0_4 = arith.constant 0 : index
    %c0_5 = arith.constant 0 : index
    %7 = vector.load %arg4[%c0_4, %c0_5] : memref<16x128xf32, #tpu.memory_space<vmem>>, vector<16x128xf32>
    %8 = arith.addf %7, %6 : vector<16x128xf32>
    %c0_6 = arith.constant 0 : index
    %c0_7 = arith.constant 0 : index
    %9 = vector.load %arg4[%c0_6, %c0_7] : memref<16x128xf32, #tpu.memory_space<vmem>>, vector<16x128xf32>
    tpu.vector_store %arg4[%c0_6, %c0_7], %8 {strides = array<i32>} : memref<16x128xf32, #tpu.memory_space<vmem>>, vector<16x128xf32>,
    %c0_i32_8 = arith.constant 0 : i32
    %10 = arith.cmpi eq, %arg0, %c0_i32_8 : i32
    %11 = arith.extui %10 : i1 to i32
    %c0_i32_9 = arith.constant 0 : i32
    %12 = arith.cmpi ne, %11, %c0_i32_9 : i32
    scf.if %12 {
      %c0_10 = arith.constant 0 : index
      %c0_11 = arith.constant 0 : index
      %13 = vector.load %arg4[%c0_10, %c0_11] : memref<16x128xf32, #tpu.memory_space<vmem>>, vector<16x128xf32>
      %cst = arith.constant dense<0.000000e+00> : vector<128xf32>
      %14 = vector.multi_reduction <add>, %13, %cst [0] : vector<16x128xf32> to vector<128xf32>
      %15 = vector.shape_cast %14 : vector<128xf32> to vector<1x128xf32>
      %cst_12 = arith.constant dense<0.000000e+00> : vector<1xf32>
      %16 = vector.multi_reduction <add>, %15, %cst_12 [1] : vector<1x128xf32> to vector<1xf32>
      %17 = vector.shape_cast %16 : vector<1xf32> to vector<1x1xf32>
      %cst_13 = arith.constant 4.8828125E-4 : f32
      %18 = vector.broadcast %cst_13 : f32 to vector<1x1xf32>
      %19 = arith.mulf %17, %18 : vector<1x1xf32>
      %c0_14 = arith.constant 0 : index
      %c0_15 = arith.constant 0 : index
      %20 = vector.load %arg3[%c0_14, %c0_15] : memref<1x1xf32, #tpu.memory_space<vmem>>, vector<1x1xf32>
      tpu.vector_store %arg3[%c0_14, %c0_15], %19 {strides = array<i32>} : memref<1x1xf32, #tpu.memory_space<vmem>>, vector<1x1xf32>,
    } else {
    }
    return
  }
  func.func @transform_0(%arg0: i32) -> (i32, i32) {
    %c0_i32 = arith.constant 0 : i32
    %c0_i32_0 = arith.constant 0 : i32
    return %arg0, %c0_i32 : i32, i32
  }
  func.func @transform_1(%arg0: i32) -> (i32, i32) {
    %c0_i32 = arith.constant 0 : i32
    %c0_i32_0 = arith.constant 0 : i32
    return %arg0, %c0_i32 : i32, i32
  }
  func.func @transform_2(%arg0: i32) -> (i32, i32) {
    %c0_i32 = arith.constant 0 : i32
    %c0_i32_0 = arith.constant 0 : i32
    %c0_i32_1 = arith.constant 0 : i32
    return %c0_i32, %c0_i32_0 : i32, i32
  }
}

</mosaic_0001>

<bundles_post_ra>
// kernel: tpu_custom_call.1
= control target key start
LH: loop header
LB: loop body
LE: loop exit
PB: predicated region body
PF: predicated region fallthrough
CT: control target
= control target key end

     0   :  { %7 = vsyncpa [#allocation4], 0  ;;  %s193_s0 = inlined_call_operand.hbm [shape: f32[16,128], index: 0, kind: input, shape index: {}]   ;;  %s194_s1 = inlined_call_operand.hbm [shape: f32[16,128], index: 1, kind: input, shape index: {}]   ;;  %s195_s2 = inlined_call_operand.hbm [shape: f32[1,1], index: 2, kind: output, shape index: {}]  }
   0x1   :  { %8 = vsyncpa [#allocation7], 0 }
   0x2   :  { %9 = vsyncpa [#allocation5], 0  ;;  %s164_s9 = smov [#allocation3]  }
   0x3   :  { %s15_s10 = sshll.u32 %s164_s9, 4  ;;  %s16_s10 = int_to_ptr.vmem [resolvable:$true] %s15_s10 }
   0x4   :  { %s106_s11 = scalar_lea.vmem %s16_s10, 256  ;;  %p111_p1 = scmp.lt.s32.totalorder %s16_s10, %s16_s10 }
   0x5   :  { %p107_p0 = scmp.ne.s32.totalorder %s16_s10, %s106_s11  ;;  %p112_p2 = scmp.lt.s32.totalorder %s106_s11, %s106_s11 }
   0x7   :  { %p113_p3 = por %p112_p2, %p111_p1 }
   0x9   :  { %p114_p4 = pnand %p113_p3, %p107_p0 }
   0xb   :  { %117 = shalt.err (!%p114_p4)
}
   0xc   :  { %s165_s12 = smov 128   ;;  %s166_s13 = smov 8  }
   0xd   :  { %21 = dma.hbm_to_vmem [thread:$0]  %s193_s0, 256, %s16_s10, [#allocation4], %s165_s12, %s165_s12, %s166_s13  }
   0xe   :  { %s167_s16 = smov [#allocation6]  }
   0xf   :  { %s27_s17 = sshll.u32 %s167_s16, 4  ;;  %s28_s17 = int_to_ptr.vmem [resolvable:$true] %s27_s17 }
  0x10   :  { %s126_s18 = scalar_lea.vmem %s28_s17, 256  ;;  %p131_p6 = scmp.lt.s32.totalorder %s28_s17, %s28_s17 }
  0x11   :  { %p127_p5 = scmp.ne.s32.totalorder %s28_s17, %s126_s18  ;;  %p132_p7 = scmp.lt.s32.totalorder %s126_s18, %s126_s18 }
  0x13   :  { %p133_p8 = por %p132_p7, %p131_p6 }
  0x15   :  { %p134_p9 = pnand %p133_p8, %p127_p5 }
  0x17   :  { %137 = shalt.err (!%p134_p9)
}
  0x18   :  { %33 = dma.hbm_to_vmem [thread:$0]  %s194_s1, 256, %s28_s17, [#allocation7], %s165_s12, %s165_s12, %s166_s13  }
  0x19   :  { %158 = dma.done.wait [#allocation4], 256  }
  0x1a   :  { %159 = vsyncadd [#allocation4], 4294967040 }
  0x1b   :  { %160 = dma.done.wait [#allocation7], 256  }
  0x1c   :  { %161 = vsyncadd [#allocation7], 4294967040  ;;  %v46_v0 = vld [vmem:[#allocation3] sm:$0xff]  ;;  %v47_v1 = vld [vmem:[#allocation3 + $0x8] sm:$0xff]  ;;  %s168_s0 = smov [#allocation8]   ;;  %vm75_vm0 = vcmask 0  }
  0x1d   :  { %v48_v2 = vld [vmem:[#allocation6] sm:$0xff]  ;;  %v49_v3 = vld [vmem:[#allocation6 + $0x8] sm:$0xff]  ;;  %s83_s1 = sshll.u32 %s168_s0, 4  ;;  %s84_s1 = int_to_ptr.vmem [resolvable:$true] %s83_s1 }
  0x1e   :  { %v50_v4 = vsub.f32 %v46_v0, %v48_v2  ;;  %v51_v5 = vsub.f32 %v47_v1, %v49_v3  ;;  %s138_s21 = scalar_lea.vmem %s84_s1, 16  ;;  %s142_s22 = scalar_lea.vmem %s84_s1, 32 }
  0x1f   :  { %p139_p10 = scmp.ne.s32.totalorder %s84_s1, %s138_s21  ;;  %p143_p11 = scmp.lt.s32.totalorder %s84_s1, %s84_s1 }
  0x20   :  { %v52_v6 = vand.u32 2147483647, %v50_v4  ;;  %v53_v7 = vand.u32 2147483647, %v51_v5  ;;  %p144_p12 = scmp.lt.s32.totalorder %s142_s22, %s138_s21 }
  0x22   :  { %v65_v8 = vadd.f32 %v53_v7, %v52_v6  ;;  %p145_p13 = por %p144_p12, %p143_p11 }
  0x24   :  { %v66_v9 = vrot.slane %v65_v8, 4  ;;  %p146_p0 = pnand %p145_p13, %p139_p10 }
  0x26   :  { %v67_v10 = vadd.f32 %v66_v9, %v65_v8 }
  0x28   :  { %v68_v11 = vrot.slane %v67_v10, 2 }
  0x2a   :  { %v69_v12 = vadd.f32 %v68_v11, %v67_v10 }
  0x2c   :  { %v70_v13 = vrot.slane %v69_v12, 1 }
  0x2e   :  { %v71_v14 = vadd.f32 %v70_v13, %v69_v12 }
  0x30   :  { %72 = vadd.xlane.f32.xlu0 %v71_v14 }
  0xb9   :  { %v73_v15 = vpop.xlane.xlu0 %72 }
  0xba   :  { %v74_v16 = vmul.f32 0.00048828125, %v73_v15 }
  0xbc   :  { %76 = vst.msk [vmem:[#allocation8] sm:$0x1] %vm75_vm0, %v74_v16 }
  0xbd   :  { %149 = shalt.err (!%p146_p0)
}
  0xbe   :  { %86 = dma.vmem_to_hbm [thread:$0]  %s84_s1, 16, %s195_s2, [#allocation5]  }
  0xbf   :  { %162 = dma.done.wait [#allocation5], 16  }
  0xc0   :  { %163 = vsyncadd [#allocation5], 4294967280 }
  0xc1   :  { %90 = vsyncpa [#allocation4], 1 }
  0xc2   :  { %91 = vsyncpa [#allocation7], 1 }
  0xc3   :  { %92 = vsyncpa [#allocation5], 1 }

</bundles_post_ra>
